<compile_context>
chip_gen: v7x
topology: tpu7x:2x2x1
jax: 0.10.0
libtpu: 0.0.40
codegen_flags: <defaults>
</compile_context>

<pallas_src>
import functools

import jax
import jax.numpy as jnp
from jax.experimental import pallas as pl
from jax.experimental.pallas import tpu as pltpu

_NEG_FILL = -1.0e30  # padding fill; stays finite after * (1/T) for any sane T


def _round_up(x, m):
    return ((x + m - 1) // m) * m


def _norm_softmax_loss_kernel(x_ref, o_ref, col_m_ref, col_s_ref, acc_ref, *,
                              inv_t, n_true):
    i = pl.program_id(0)
    n_tiles = pl.num_programs(0)
    tm, cols_pad = x_ref.shape

    @pl.when(i == 0)
    def _init():
        col_m_ref[...] = jnp.full_like(col_m_ref, _NEG_FILL)   # running col scale
        col_s_ref[...] = jnp.zeros_like(col_s_ref)             # running col sum
        acc_ref[...] = jnp.zeros_like(acc_ref)                 # row-side scalar acc

    # Native-dtype DMA; cast + scale by precomputed 1/T inside the kernel.
    s = x_ref[...].astype(jnp.float32) * jnp.float32(inv_t)    # (tm, cols_pad)

    row_ids = jax.lax.broadcasted_iota(jnp.int32, (tm, 1), 0) + i * tm
    row_valid = row_ids < n_true                               # (tm, 1) bool

    # ---- row-direction logsumexp (exact per-row shift; the only full exp pass)
    row_max = jnp.max(s, axis=1, keepdims=True)                # (tm, 1)
    e = jnp.exp(s - row_max)                                   # (tm, cols_pad)
    row_sum = jnp.sum(e, axis=1, keepdims=True)                # (tm, 1)
    row_lse = row_max + jnp.log(row_sum)                       # (tm, 1)

    # ---- diagonal: only its sum is needed (shared by both softmax directions)
    col_ids = jax.lax.broadcasted_iota(jnp.int32, (tm, cols_pad), 1)
    diag_mask = col_ids == row_ids                             # single compare
    diag_per_row = jnp.sum(jnp.where(diag_mask, s, 0.0), axis=1, keepdims=True)

    # accumulate sum over valid rows of (2*s_ii - row_lse_i)
    tile_row_acc = jnp.sum(
        jnp.where(row_valid, 2.0 * diag_per_row - row_lse, 0.0))
    acc_ref[...] += tile_row_acc

    # ---- online column logsumexp, reusing e (no second full exp pass)
    # tile_partial_j = sum_i exp(s_ij - ref_t) = sum_i e_ij * exp(row_max_i - ref_t)
    # NOTE: this sublane reduction could be offloaded to the MXU (w_row @ e) to
    # free the XLU on v6e/v7x, but the kernel is HBM-bound after the single-exp
    # change and the VPU+XLU form keeps full f32 accumulation accuracy.
    ref_t = jnp.max(row_max)                                   # per-tile scalar ref
    w = jnp.exp(row_max - ref_t)                               # (tm, 1); 0 for pad rows
    tile_partial = jnp.sum(e * w, axis=0, keepdims=True)       # (1, cols_pad)
    m_old = col_m_ref[...]
    m_new = jnp.maximum(m_old, ref_t)
    col_s_ref[...] = (col_s_ref[...] * jnp.exp(m_old - m_new)
                      + tile_partial * jnp.exp(ref_t - m_new))
    col_m_ref[...] = m_new

    @pl.when(i == n_tiles - 1)
    def _finalize():
        col_ids1 = jax.lax.broadcasted_iota(jnp.int32, (1, cols_pad), 1)
        col_valid = col_ids1 < n_true
        s_safe = jnp.where(col_valid, col_s_ref[...], 1.0)     # avoid log(0) on pad
        col_lse = col_m_ref[...] + jnp.log(s_safe)             # (1, cols_pad)
        col_lse_sum = jnp.sum(jnp.where(col_valid, col_lse, 0.0))
        total = jnp.sum(acc_ref[...]) - col_lse_sum
        o_ref[0, 0] = -total * jnp.float32(1.0 / n_true)


def norm_softmax_loss(x, temperature=0.05, tm=None):
    """x: (N, N) similarity matrix (any float dtype). Returns scalar f32 loss."""
    n, m = x.shape
    assert n == m, "NormSoftmaxLoss expects a square similarity matrix"

    cols_pad = _round_up(n, 128)
    if tm is None:
        # Keep the f32 working tile around ~2 MiB so the double-buffered input
        # plus elementwise temporaries stay well inside the scoped VMEM limit
        # on all of v5e / v6e / v7x (v7x has only 64 MiB physical VMEM).
        budget = 2 * 1024 * 1024
        tm = budget // (4 * cols_pad)
        tm = int(max(8, min(256, (tm // 8) * 8)))
    tm = int(min(tm, _round_up(n, 8)))
    assert tm % 8 == 0 and tm >= 8, "row tile must be a positive multiple of 8"
    rows_pad = _round_up(n, tm)

    if (rows_pad, cols_pad) != (n, n):
        x = jnp.pad(x, ((0, rows_pad - n), (0, cols_pad - n)),
                    constant_values=jnp.asarray(_NEG_FILL, dtype=x.dtype))

    kernel = functools.partial(_norm_softmax_loss_kernel,
                               inv_t=1.0 / float(temperature), n_true=n)

    out = pl.pallas_call(
        kernel,
        out_shape=jax.ShapeDtypeStruct((1, 1), jnp.float32),
        grid_spec=pltpu.PrefetchScalarGridSpec(
            num_scalar_prefetch=0,
            grid=(rows_pad // tm,),
            in_specs=[pl.BlockSpec((tm, cols_pad), lambda i: (i, 0))],
            out_specs=pl.BlockSpec(memory_space=pltpu.MemorySpace.SMEM),
            scratch_shapes=[
                pltpu.VMEM((1, cols_pad), jnp.float32),   # column running scale
                pltpu.VMEM((1, cols_pad), jnp.float32),   # column running sum
                pltpu.VMEM((1, 1), jnp.float32),          # row-side accumulator
            ],
        ),
        compiler_params=pltpu.CompilerParams(
            dimension_semantics=("arbitrary",),
            vmem_limit_bytes=32 * 1024 * 1024,
        ),
    )(x)
    return out[0, 0]


def _reference_loss(x, temperature=0.05):
    xs = x.astype(jnp.float32) / temperature
    i_logsm = jax.nn.log_softmax(xs, axis=1)
    j_logsm = jax.nn.log_softmax(xs.T, axis=1)
    return -jnp.mean(jnp.diag(i_logsm)) - jnp.mean(jnp.diag(j_logsm))


if __name__ == "__main__":
    key = jax.random.PRNGKey(0)

    # Small "batch x batch" similarity matrices, as the module's forward implies.
    # N=200 with tm=128 exercises multi-tile streaming, the online column-LSE
    # update, and row/column padding (200 -> 256). N=8 exercises the tiny path.
    for n, tm in ((8, None), (200, 128)):
        x = jax.random.normal(jax.random.fold_in(key, n), (n, n),
                              dtype=jnp.float32)
        loss = jax.block_until_ready(norm_softmax_loss(x, temperature=0.05, tm=tm))
        ref = _reference_loss(x, temperature=0.05)
        assert jnp.allclose(loss, ref, rtol=1e-4, atol=1e-4), (n, loss, ref)

    print("KERNEL_OK")
</pallas_src>

<mosaic_0001>
module attributes {stable_mosaic.version = 11 : i64} {
  func.func @_norm_softmax_loss_kernel(%arg0: i32, %arg1: memref<8x128xf32, #tpu.memory_space<vmem>>, %arg2: memref<1x1xf32, #tpu.memory_space<smem>>, %arg3: memref<1x128xf32, #tpu.memory_space<vmem>>, %arg4: memref<1x128xf32, #tpu.memory_space<vmem>>, %arg5: memref<1x1xf32, #tpu.memory_space<vmem>>) attributes {dimension_semantics = [#tpu.dimension_semantics<arbitrary>], iteration_bounds = array<i64: 1>, scalar_prefetch = 0 : i64, scratch_operands = 3 : i64, tpu.core_type = #tpu.core_type<tc>, window_params = [{transform_indices = @transform_0, window_bounds = array<i64: 8, 128>}, {transform_indices = @transform_1, window_bounds = array<i64: 1, 1>}]} {
    %c0_i32 = arith.constant 0 : i32
    %0 = arith.cmpi eq, %arg0, %c0_i32 : i32
    %1 = arith.extui %0 : i1 to i32
    %c0_i32_0 = arith.constant 0 : i32
    %2 = arith.cmpi ne, %1, %c0_i32_0 : i32
    scf.if %2 {
      %cst_26 = arith.constant -1.000000e+30 : f32
      %69 = vector.broadcast %cst_26 : f32 to vector<1x128xf32>
      %c0_27 = arith.constant 0 : index
      %c0_28 = arith.constant 0 : index
      %70 = vector.load %arg3[%c0_27, %c0_28] : memref<1x128xf32, #tpu.memory_space<vmem>>, vector<1x128xf32>
      tpu.vector_store %arg3[%c0_27, %c0_28], %69 {strides = array<i32>} : memref<1x128xf32, #tpu.memory_space<vmem>>, vector<1x128xf32>,
      %cst_29 = arith.constant 0.000000e+00 : f32
      %71 = vector.broadcast %cst_29 : f32 to vector<1x128xf32>
      %c0_30 = arith.constant 0 : index
      %c0_31 = arith.constant 0 : index
      %72 = vector.load %arg4[%c0_30, %c0_31] : memref<1x128xf32, #tpu.memory_space<vmem>>, vector<1x128xf32>
      tpu.vector_store %arg4[%c0_30, %c0_31], %71 {strides = array<i32>} : memref<1x128xf32, #tpu.memory_space<vmem>>, vector<1x128xf32>,
      %cst_32 = arith.constant 0.000000e+00 : f32
      %73 = vector.broadcast %cst_32 : f32 to vector<1x1xf32>
      %c0_33 = arith.constant 0 : index
      %c0_34 = arith.constant 0 : index
      %74 = vector.load %arg5[%c0_33, %c0_34] : memref<1x1xf32, #tpu.memory_space<vmem>>, vector<1x1xf32>
      tpu.vector_store %arg5[%c0_33, %c0_34], %73 {strides = array<i32>} : memref<1x1xf32, #tpu.memory_space<vmem>>, vector<1x1xf32>,
    } else {
    }
    %c0 = arith.constant 0 : index
    %c0_1 = arith.constant 0 : index
    %3 = vector.load %arg1[%c0, %c0_1] : memref<8x128xf32, #tpu.memory_space<vmem>>, vector<8x128xf32>
    %cst = arith.constant 2.000000e+01 : f32
    %4 = vector.broadcast %cst : f32 to vector<8x128xf32>
    %5 = arith.mulf %3, %4 : vector<8x128xf32>
    %6 = tpu.iota {dimensions = array<i32: 0>} : vector<8x1xi32>
    %c8_i32 = arith.constant 8 : i32
    %7 = arith.muli %arg0, %c8_i32 : i32
    %8 = vector.broadcast %7 : i32 to vector<8x1xi32>
    %9 = arith.addi %6, %8 : vector<8x1xi32>
    %c8_i32_2 = arith.constant 8 : i32
    %10 = vector.broadcast %c8_i32_2 : i32 to vector<8x1xi32>
    %11 = arith.cmpi slt, %9, %10 : vector<8x1xi32>
    %cst_3 = arith.constant dense<0xFF800000> : vector<8xf32>
    %12 = vector.multi_reduction <maximumf>, %5, %cst_3 [1] : vector<8x128xf32> to vector<8xf32>
    %13 = vector.shape_cast %12 : vector<8xf32> to vector<8x1xf32>
    %14 = vector.broadcast %13 : vector<8x1xf32> to vector<8x128xf32>
    %15 = arith.subf %5, %14 : vector<8x128xf32>
    %16 = math.exp %15 : vector<8x128xf32>
    %cst_4 = arith.constant dense<0.000000e+00> : vector<8xf32>
    %17 = vector.multi_reduction <add>, %16, %cst_4 [1] : vector<8x128xf32> to vector<8xf32>
    %18 = vector.shape_cast %17 : vector<8xf32> to vector<8x1xf32>
    %19 = math.log %18 : vector<8x1xf32>
    %20 = arith.addf %13, %19 : vector<8x1xf32>
    %21 = tpu.iota {dimensions = array<i32: 1>} : vector<8x128xi32>
    %22 = vector.broadcast %9 : vector<8x1xi32> to vector<8x128xi32>
    %23 = arith.cmpi eq, %21, %22 : vector<8x128xi32>
    %cst_5 = arith.constant 0.000000e+00 : f32
    %24 = vector.broadcast %cst_5 : f32 to vector<8x128xf32>
    %25 = arith.select %23, %5, %24 : vector<8x128xi1>, vector<8x128xf32>
    %cst_6 = arith.constant dense<0.000000e+00> : vector<8xf32>
    %26 = vector.multi_reduction <add>, %25, %cst_6 [1] : vector<8x128xf32> to vector<8xf32>
    %27 = vector.shape_cast %26 : vector<8xf32> to vector<8x1xf32>
    %cst_7 = arith.constant 2.000000e+00 : f32
    %28 = vector.broadcast %cst_7 : f32 to vector<8x1xf32>
    %29 = arith.mulf %28, %27 : vector<8x1xf32>
    %30 = arith.subf %29, %20 : vector<8x1xf32>
    %cst_8 = arith.constant 0.000000e+00 : f32
    %31 = vector.broadcast %cst_8 : f32 to vector<8x1xf32>
    %32 = arith.select %11, %30, %31 : vector<8x1xi1>, vector<8x1xf32>
    %33 = vector.shape_cast %32 : vector<8x1xf32> to vector<1x8x1xf32>
    %cst_9 = arith.constant dense<0.000000e+00> : vector<1xf32>
    %34 = vector.multi_reduction <add>, %33, %cst_9 [1, 2] : vector<1x8x1xf32> to vector<1xf32>
    %35 = vector.shape_cast %34 : vector<1xf32> to vector<1x1x1xf32>
    %36 = vector.extract %35[0, 0, 0] : f32 from vector<1x1x1xf32>
    %c0_10 = arith.constant 0 : index
    %c0_11 = arith.constant 0 : index
    %37 = vector.load %arg5[%c0_10, %c0_11] : memref<1x1xf32, #tpu.memory_space<vmem>>, vector<1x1xf32>
    %38 = vector.broadcast %36 : f32 to vector<1x1xf32>
    %39 = arith.addf %37, %38 : vector<1x1xf32>
    %c0_12 = arith.constant 0 : index
    %c0_13 = arith.constant 0 : index
    %40 = vector.load %arg5[%c0_12, %c0_13] : memref<1x1xf32, #tpu.memory_space<vmem>>, vector<1x1xf32>
    tpu.vector_store %arg5[%c0_12, %c0_13], %39 {strides = array<i32>} : memref<1x1xf32, #tpu.memory_space<vmem>>, vector<1x1xf32>,
    %41 = vector.shape_cast %13 : vector<8x1xf32> to vector<1x8x1xf32>
    %cst_14 = arith.constant dense<0xFF800000> : vector<1xf32>
    %42 = vector.multi_reduction <maximumf>, %41, %cst_14 [1, 2] : vector<1x8x1xf32> to vector<1xf32>
    %43 = vector.shape_cast %42 : vector<1xf32> to vector<1x1x1xf32>
    %44 = vector.extract %43[0, 0, 0] : f32 from vector<1x1x1xf32>
    %45 = vector.broadcast %44 : f32 to vector<8x1xf32>
    %46 = arith.subf %13, %45 : vector<8x1xf32>
    %47 = math.exp %46 : vector<8x1xf32>
    %48 = vector.broadcast %47 : vector<8x1xf32> to vector<8x128xf32>
    %49 = arith.mulf %16, %48 : vector<8x128xf32>
    %cst_15 = arith.constant dense<0.000000e+00> : vector<128xf32>
    %50 = vector.multi_reduction <add>, %49, %cst_15 [0] : vector<8x128xf32> to vector<128xf32>
    %51 = vector.shape_cast %50 : vector<128xf32> to vector<1x128xf32>
    %c0_16 = arith.constant 0 : index
    %c0_17 = arith.constant 0 : index
    %52 = vector.load %arg3[%c0_16, %c0_17] : memref<1x128xf32, #tpu.memory_space<vmem>>, vector<1x128xf32>
    %53 = vector.broadcast %44 : f32 to vector<1x128xf32>
    %54 = arith.maximumf %52, %53 : vector<1x128xf32>
    %c0_18 = arith.constant 0 : index
    %c0_19 = arith.constant 0 : index
    %55 = vector.load %arg4[%c0_18, %c0_19] : memref<1x128xf32, #tpu.memory_space<vmem>>, vector<1x128xf32>
    %56 = arith.subf %52, %54 : vector<1x128xf32>
    %57 = math.exp %56 : vector<1x128xf32>
    %58 = arith.mulf %55, %57 : vector<1x128xf32>
    %59 = vector.broadcast %44 : f32 to vector<1x128xf32>
    %60 = arith.subf %59, %54 : vector<1x128xf32>
    %61 = math.exp %60 : vector<1x128xf32>
    %62 = arith.mulf %51, %61 : vector<1x128xf32>
    %63 = arith.addf %58, %62 : vector<1x128xf32>
    %c0_20 = arith.constant 0 : index
    %c0_21 = arith.constant 0 : index
    %64 = vector.load %arg4[%c0_20, %c0_21] : memref<1x128xf32, #tpu.memory_space<vmem>>, vector<1x128xf32>
    tpu.vector_store %arg4[%c0_20, %c0_21], %63 {strides = array<i32>} : memref<1x128xf32, #tpu.memory_space<vmem>>, vector<1x128xf32>,
    %c0_22 = arith.constant 0 : index
    %c0_23 = arith.constant 0 : index
    %65 = vector.load %arg3[%c0_22, %c0_23] : memref<1x128xf32, #tpu.memory_space<vmem>>, vector<1x128xf32>
    tpu.vector_store %arg3[%c0_22, %c0_23], %54 {strides = array<i32>} : memref<1x128xf32, #tpu.memory_space<vmem>>, vector<1x128xf32>,
    %c0_i32_24 = arith.constant 0 : i32
    %66 = arith.cmpi eq, %arg0, %c0_i32_24 : i32
    %67 = arith.extui %66 : i1 to i32
    %c0_i32_25 = arith.constant 0 : i32
    %68 = arith.cmpi ne, %67, %c0_i32_25 : i32
    scf.if %68 {
      %69 = tpu.iota {dimensions = array<i32: 1>} : vector<1x128xi32>
      %c8_i32_26 = arith.constant 8 : i32
      %70 = vector.broadcast %c8_i32_26 : i32 to vector<1x128xi32>
      %71 = arith.cmpi slt, %69, %70 : vector<1x128xi32>
      %c0_27 = arith.constant 0 : index
      %c0_28 = arith.constant 0 : index
      %72 = vector.load %arg4[%c0_27, %c0_28] : memref<1x128xf32, #tpu.memory_space<vmem>>, vector<1x128xf32>
      %cst_29 = arith.constant 1.000000e+00 : f32
      %73 = vector.broadcast %cst_29 : f32 to vector<1x128xf32>
      %74 = arith.select %71, %72, %73 : vector<1x128xi1>, vector<1x128xf32>
      %c0_30 = arith.constant 0 : index
      %c0_31 = arith.constant 0 : index
      %75 = vector.load %arg3[%c0_30, %c0_31] : memref<1x128xf32, #tpu.memory_space<vmem>>, vector<1x128xf32>
      %76 = math.log %74 : vector<1x128xf32>
      %77 = arith.addf %75, %76 : vector<1x128xf32>
      %cst_32 = arith.constant 0.000000e+00 : f32
      %78 = vector.broadcast %cst_32 : f32 to vector<1x128xf32>
      %79 = arith.select %71, %77, %78 : vector<1x128xi1>, vector<1x128xf32>
      %80 = vector.shape_cast %79 : vector<1x128xf32> to vector<1x1x128xf32>
      %cst_33 = arith.constant dense<0.000000e+00> : vector<1xf32>
      %81 = vector.multi_reduction <add>, %80, %cst_33 [1, 2] : vector<1x1x128xf32> to vector<1xf32>
      %82 = vector.shape_cast %81 : vector<1xf32> to vector<1x1x1xf32>
      %83 = vector.extract %82[0, 0, 0] : f32 from vector<1x1x1xf32>
      %c0_34 = arith.constant 0 : index
      %c0_35 = arith.constant 0 : index
      %84 = vector.load %arg5[%c0_34, %c0_35] : memref<1x1xf32, #tpu.memory_space<vmem>>, vector<1x1xf32>
      %85 = vector.shape_cast %84 : vector<1x1xf32> to vector<1x1x1xf32>
      %cst_36 = arith.constant dense<0.000000e+00> : vector<1xf32>
      %86 = vector.multi_reduction <add>, %85, %cst_36 [1, 2] : vector<1x1x1xf32> to vector<1xf32>
      %87 = vector.shape_cast %86 : vector<1xf32> to vector<1x1x1xf32>
      %88 = vector.extract %87[0, 0, 0] : f32 from vector<1x1x1xf32>
      %89 = arith.subf %88, %83 : f32
      %cst_37 = arith.constant 0.000000e+00 : f32
      %90 = arith.subf %cst_37, %89 : f32
      %cst_38 = arith.constant 1.250000e-01 : f32
      %91 = arith.mulf %90, %cst_38 : f32
      %c0_39 = arith.constant 0 : index
      %c0_40 = arith.constant 0 : index
      %92 = memref.load %arg2[%c0_39, %c0_40] : memref<1x1xf32, #tpu.memory_space<smem>>
      memref.store %91, %arg2[%c0_39, %c0_40] : memref<1x1xf32, #tpu.memory_space<smem>>
    } else {
    }
    return
  }
  func.func @transform_0(%arg0: i32) -> (i32, i32) {
    %c0_i32 = arith.constant 0 : i32
    %c0_i32_0 = arith.constant 0 : i32
    return %arg0, %c0_i32 : i32, i32
  }
  func.func @transform_1(%arg0: i32) -> (i32, i32) {
    %c0_i32 = arith.constant 0 : i32
    %c0_i32_0 = arith.constant 0 : i32
    %c0_i32_1 = arith.constant 0 : i32
    return %c0_i32, %c0_i32_0 : i32, i32
  }
}

</mosaic_0001>

<bundles_post_ra>
// kernel: tpu_custom_call.1
= control target key start
LH: loop header
LB: loop body
LE: loop exit
PB: predicated region body
PF: predicated region fallthrough
CT: control target
= control target key end

     0   :  { %6 = vsyncpa [#allocation6], 0  ;;  %s252_s0 = inlined_call_operand.hbm [shape: f32[8,128], index: 0, kind: input, shape index: {}]   ;;  %s253_s1 = inlined_call_operand.hbm [shape: f32[1,1], index: 1, kind: output, shape index: {}]  }
   0x1   :  { %7 = vsyncpa [#allocation7], 0  ;;  %s208_s6 = smov [#allocation5]   ;;  %s172_s10 = scalar_lea.hbm %s252_s0, 128 }
   0x2   :  { %s14_s7 = sshll.u32 %s208_s6, 4  ;;  %p173_p0 = scmp.ne.s32.totalorder %s252_s0, %s172_s10  ;;  %s15_s7 = int_to_ptr.vmem [resolvable:$true] %s14_s7 }
   0x3   :  { %p176_p1 = scmp.lt.u32.totalorder %s172_s10, %s252_s0 }
   0x5   :  { %p178_p2 = pnand %p176_p1, %p173_p0 }
   0x7   :  { %181 = shalt.err (!%p178_p2)
}
   0x8   :  { %s182_s15 = scalar_lea.vmem %s15_s7, 128  ;;  %p187_p4 = scmp.lt.s32.totalorder %s15_s7, %s15_s7 }
   0x9   :  { %p183_p3 = scmp.ne.s32.totalorder %s15_s7, %s182_s15  ;;  %p188_p5 = scmp.lt.s32.totalorder %s182_s15, %s182_s15 }
   0xb   :  { %p189_p6 = por %p188_p5, %p187_p4 }
   0xd   :  { %p190_p7 = pnand %p189_p6, %p183_p3 }
   0xf   :  { %193 = shalt.err (!%p190_p7)
}
  0x10   :  { %17 = dma.hbm_to_vmem [thread:$0]  %s252_s0, 128, %s15_s7, [#allocation6]  }
  0x11   :  { %204 = dma.done.wait [#allocation6], 128  }
  0x12   :  { %205 = vsyncadd [#allocation6], 4294967168  ;;  %v29_v0 = vld [vmem:[#allocation5] sm:$0xff]  ;;  %v31_v2 = vlaneseq  ;;  %vm56_vm1 = vcmask 7168   ;;  %vm27_vm2 = vcmask 0   ;;  %v209_v18 = vmov 0.0  }
  0x13   :  { %v30_v1 = vmul.f32 20.0, %v29_v0  ;;  %26 = vst [vmem:[#allocation3] sm:$0x1] %v209_v18  ;;  %28 = vst.msk [vmem:[#allocation4] sm:$0x1] %vm27_vm2, %v209_v18  ;;  %vm115_vm4 = vcmask 1040384  }
  0x14   :  { %v32_v3 = vshrl.u32 %v31_v2, 7  ;;  %v234_v4 = vand.u32 127, %v31_v2  ;;  %v210_v19 = vmov -1e+30   ;;  %s194_s26 = scalar_lea.hbm %s253_s1, 16 }
  0x15   :  { %37 = vmax.xlane.f32.xlu0 %v30_v1  ;;  %25 = vst [vmem:[#allocation2] sm:$0x1] %v210_v19  ;;  %p195_p8 = scmp.ne.s32.totalorder %s253_s1, %s194_s26  ;;  %p198_p9 = scmp.lt.u32.totalorder %s194_s26, %s253_s1 }
  0x16   :  { %vm49_vm0 = vcmp.eq.s32.totalorder %v234_v4, %v32_v3  ;;  %vm107_vm3 = vcmp.lt.s32.totalorder %v234_v4, 8 }
  0x17   :  { %v50_v5 = vsel %vm49_vm0, %v30_v1, 0.0  ;;  %p200_p10 = pnand %p198_p9, %p195_p8 }
  0x18   :  { %51 = vadd.xlane.f32.xlu1 %v50_v5 }
  0x1a   :  { %v67_v33 = vld [vmem:[#allocation4] sm:$0x1]  ;;  %v92_v53 = vld [vmem:[#allocation3] sm:$0x1] }
  0x1c   :  { %v90_v34 = vld [vmem:[#allocation2] sm:$0x1] }
  0xa2   :  { %v38_v6 = vpop.xlane.xlu0 %37 }
  0xa3   :  { %v39_v7 = vsub.f32 %v30_v1, %v38_v6  ;;  %v72_v20 = vrot.slane %v38_v6, 4 }
  0xa5   :  { %v40_v8 = vmul.f32 1.442695, %v39_v7  ;;  %v52_v11 = vpop.xlane.xlu1 %51  ;;  %v73_v21 = vmax.f32 %v38_v6, %v72_v20 }
  0xa6   :  { %v53_v14 = vmul.f32 2.0, %v52_v11 }
  0xa7   :  { %160 = vpow2.f32 %v40_v8  ;;  %v74_v23 = vrot.slane %v73_v21, 2 }
  0xa9   :  { %v75_v26 = vmax.f32 %v73_v21, %v74_v23 }
  0xab   :  { %v76_v29 = vrot.slane %v75_v26, 1 }
  0xad   :  { %v77_v32 = vmax.f32 %v75_v26, %v76_v29 }
  0xb1   :  { %v161_v9 = vpop.eup %160 }
  0xb2   :  { %42 = vadd.xlane.f32.xlu0 %v161_v9 }
 0x13f   :  { %v43_v10 = vpop.xlane.xlu0 %42 }
 0x140   :  { %162 = vlog2.f32 %v43_v10 }
 0x14a   :  { %v163_v12 = vpop.eup %162 }
 0x14b   :  { %v45_v13 = vmul.f32 0.6931472, %v163_v12 }
 0x14d   :  { %v46_v15 = vadd.f32 %v45_v13, %v38_v6 }
 0x14f   :  { %v54_v16 = vsub.f32 %v53_v14, %v46_v15 }
 0x151   :  { %v57_v17 = vsel %vm56_vm1, %v54_v16, 0.0 }
 0x152   :  { %58 = vadd.xlane.f32.xlu1 %v57_v17 }
 0x1df   :  { %v59_v22 = vpop.xlane.xlu1 %58 }
 0x1e0   :  { %v60_v24 = vrot.slane %v59_v22, 4 }
 0x1e2   :  { %v61_v25 = vadd.f32 %v60_v24, %v59_v22 }
 0x1e4   :  { %v62_v27 = vrot.slane %v61_v25, 2 }
 0x1e6   :  { %v63_v28 = vadd.f32 %v62_v27, %v61_v25 }
 0x1e8   :  { %v64_v30 = vrot.slane %v63_v28, 1 }
 0x1ea   :  { %v65_v31 = vadd.f32 %v64_v30, %v63_v28 }
 0x1ec   :  { %148 = vpush %v65_v31 }
 0x1ed   :  { %150 = vpush %v77_v32 }
 0x21d   :  { %s149_s0 = spop %148 }
 0x21e   :  { %v68_v35 = vstv %s149_s0  ;;  %s151_s18 = spop %150 }
 0x21f   :  { %v69_v36 = vadd.f32 %v68_v35, %v67_v33  ;;  %v79_v37 = vstv %s151_s18 }
 0x220   :  { %v80_v38 = vsub.f32 %v38_v6, %v79_v37  ;;  %v91_v39 = vmax.f32 %v90_v34, %v79_v37 }
 0x221   :  { %71 = vst.msk [vmem:[#allocation4] sm:$0x1] %vm27_vm2, %v69_v36 }
 0x222   :  { %v81_v40 = vmul.f32 1.442695, %v80_v38  ;;  %103 = vst [vmem:[#allocation2] sm:$0x1] %v91_v39  ;;  %v93_v41 = vsub.f32 %v90_v34, %v91_v39  ;;  %v97_v42 = vsub.f32 %v79_v37, %v91_v39 }
 0x224   :  { %164 = vpow2.f32 %v81_v40  ;;  %v94_v43 = vmul.f32 1.442695, %v93_v41  ;;  %v98_v45 = vmul.f32 1.442695, %v97_v42 }
 0x226   :  { %166 = vpow2.f32 %v94_v43 }
 0x227   :  { %168 = vpow2.f32 %v98_v45 }
 0x228   :  { %v126_v4 = vld [vmem:[#allocation4] sm:$0x1] }
 0x229   :  { %v110_v63 = vld [vmem:[#allocation2] sm:$0x1] }
 0x22e   :  { %v165_v44 = vpop.eup %164 }
 0x22f   :  { %v83_v46 = vmul.f32 %v165_v44, %v161_v9 }
 0x230   :  { %v167_v52 = vpop.eup %166 }
 0x231   :  { %v84_v47 = vrot.slane %v83_v46, 4  ;;  %v169_v55 = vpop.eup %168  ;;  %v96_v56 = vmul.f32 %v167_v52, %v92_v53 }
 0x233   :  { %v85_v48 = vadd.f32 %v84_v47, %v83_v46 }
 0x235   :  { %v86_v49 = vrot.slane %v85_v48, 2 }
 0x237   :  { %v87_v50 = vadd.f32 %v86_v49, %v85_v48 }
 0x239   :  { %v88_v51 = vrot.slane %v87_v50, 1 }
 0x23b   :  { %v89_v54 = vadd.f32 %v88_v51, %v87_v50 }
 0x23d   :  { %v100_v57 = vmul.f32 %v169_v55, %v89_v54 }
 0x23f   :  { %v101_v58 = vadd.f32 %v100_v57, %v96_v56 }
 0x241   :  { %102 = vst [vmem:[#allocation3] sm:$0x1] %v101_v58 }
 0x248   :  { %v108_v59 = vld [vmem:[#allocation3] sm:$0x1] }
 0x249   :  { %v109_v60 = vsel %vm107_vm3, %v108_v59, 1.0 }
 0x24a   :  { %170 = vlog2.f32 %v109_v60 }
 0x254   :  { %v171_v61 = vpop.eup %170 }
 0x255   :  { %v112_v62 = vmul.f32 0.6931472, %v171_v61 }
 0x257   :  { %v113_v0 = vadd.f32 %v112_v62, %v110_v63 }
 0x259   :  { %v114_v1 = vsel %vm107_vm3, %v113_v0, 0.0 }
 0x25a   :  { %v116_v2 = vsel %vm115_vm4, %v114_v1, 0.0 }
 0x25b   :  { %117 = vadd.xlane.f32.xlu0 %v116_v2 }
 0x2e8   :  { %v118_v3 = vpop.xlane.xlu0 %117 }
 0x2e9   :  { %v119_v5 = vrot.slane %v118_v3, 4 }
 0x2eb   :  { %v120_v6 = vadd.f32 %v119_v5, %v118_v3 }
 0x2ed   :  { %v121_v7 = vrot.slane %v120_v6, 2 }
 0x2ef   :  { %v122_v8 = vadd.f32 %v121_v7, %v120_v6 }
 0x2f1   :  { %v123_v9 = vrot.slane %v122_v8, 1 }
 0x2f3   :  { %v124_v10 = vadd.f32 %v123_v9, %v122_v8 }
 0x2f5   :  { %152 = vpush %v124_v10 }
 0x2f6   :  { %154 = vpush %v126_v4 }
 0x326   :  { %s153_s19 = spop %152 }
 0x327   :  { %s155_s20 = spop %154 }
 0x328   :  { %s129_s21 = ssub.f32 %s155_s20, %s153_s19 }
 0x32a   :  { %s130_s22 = ssub.f32 0.0, %s129_s21 }
 0x32c   :  { %s131_s23 = smul.f32 0.125, %s130_s22 }
 0x32e   :  { %133 = sst [smem:[#allocation8]] %s131_s23 }
 0x32f   :  { %203 = shalt.err (!%p200_p10)
}
 0x330   :  { %s211_s2 = smov [#allocation8]  }
 0x331   :  { %141 = dma.smem_to_hbm %s211_s2, 16, %s253_s1, [#allocation7]  }
 0x332   :  { %206 = dma.done.wait [#allocation7], 16  }
 0x333   :  { %207 = vsyncadd [#allocation7], 4294967280 }
 0x334   :  { %145 = sfence }
 0x335   :  { %146 = vsyncpa [#allocation6], 1 }
 0x336   :  { %147 = vsyncpa [#allocation7], 1 }

</bundles_post_ra>
